<compile_context>
chip_gen: v6e
topology: v6e:2x2x1
jax: 0.10.0
libtpu: 0.0.40
codegen_flags: <defaults>
</compile_context>

<pallas_src>
import jax
import jax.numpy as jnp
from jax.experimental import pallas as pl
from jax.experimental.pallas import tpu as pltpu


def _swish(x):
    # swish(x) = x * sigmoid(x).  Sigmoid via exp (EUP) + reciprocal (EUP path) instead
    # of a VPU divide; approx=False keeps full f32 accuracy vs. the reference.
    return x * pl.reciprocal(1.0 + jnp.exp(-x), approx=False)


def fcn_kernel(x_ref, w_in_ref, b_in_ref, w_hid_ref, b_hid_ref,
               w_out_ref, b_out_ref, o_ref):
    # x_ref:     (1, TB)          lane-dense batch row
    # w_in_ref:  (H, 1), b_in_ref: (H, 1)
    # w_hid_ref: (L, H, H)  (PyTorch (out, in) layout), b_hid_ref: (L, H, 1)
    # w_out_ref: (1, H), b_out_ref: (1,)  f32 scalar in SMEM
    # o_ref:     (1, TB)          lane-dense output row
    x = x_ref[...]                                          # (1, TB)

    # input layer Linear(1, H): outer product (H,1) x (1,TB) + bias (no degenerate K=1 matmul)
    h = w_in_ref[...] * x + b_in_ref[...]                   # (H, TB)
    h = _swish(h)
    # dropout_rate = 0.0 -> identity (nn.Dropout(0.0))

    num_hidden = w_hid_ref.shape[0]                         # static at trace time, unrolled
    for l in range(num_hidden):
        # Linear(H, H) on column-major activations: h' = W @ h + b
        h = jnp.dot(w_hid_ref[l], h, preferred_element_type=jnp.float32)
        h = _swish(h + b_hid_ref[l])
        # dropout (rate 0.0) -> identity

    # output layer Linear(H, 1): (1,H) @ (H,TB) -> (1,TB); scalar bias from SMEM
    out = jnp.dot(w_out_ref[...], h, preferred_element_type=jnp.float32) + b_out_ref[0]
    o_ref[...] = out.astype(o_ref.dtype)


def fcn_forward(x, params, *, batch_tile=256):
    """x: (B, 1) float32.  params in PyTorch (out, in) layout (see init_params).

    batch_tile=256 is a multiple of both the v5e (128) and v6e/v7x (256) MXU/lane
    granules; bump to 512-1024 for very large B.
    """
    B = x.shape[0]
    assert x.ndim == 2 and x.shape[1] == 1
    assert batch_tile % 128 == 0

    H = params["w_in"].shape[0]
    L = params["w_hid"].shape[0]

    num_tiles = pl.cdiv(B, batch_tile)
    padded_B = num_tiles * batch_tile

    # Lane-dense input: one (1, batch_tile) row per grid step (batch on lanes).
    # Ragged batch handled by zero-padding; padded rows are computed and discarded.
    x_rows = jnp.pad(x[:, 0], (0, padded_B - B)).reshape(num_tiles, 1, batch_tile)

    # --- VMEM budget guard (resident weight blocks are still double-buffered) ---
    f32 = 4
    weight_bytes = 2 * f32 * (L * H * H + L * H + 3 * H + 1)
    io_bytes = 2 * f32 * 2 * batch_tile
    work_bytes = 8 * f32 * H * batch_tile            # headroom for h temporaries
    vmem_estimate = weight_bytes + io_bytes + work_bytes
    compiler_kwargs = dict(dimension_semantics=("parallel",))  # shards batch over v7x's 2 TCs
    if vmem_estimate > 12 * 1024 * 1024:
        # Raise the scoped-VMEM ceiling, capped so it still fits v7x's 64 MiB physical VMEM.
        # TODO(synk): stream w_hid one (H,H) layer per step (extra 'arbitrary' grid axis)
        # if 2*L*H*H*4B approaches that cap.
        compiler_kwargs["vmem_limit_bytes"] = int(
            min(60 * 1024 * 1024, max(32 * 1024 * 1024, 2 * vmem_estimate)))

    out_rows = pl.pallas_call(
        fcn_kernel,
        out_shape=jax.ShapeDtypeStruct((num_tiles, 1, batch_tile), jnp.float32),
        grid=(num_tiles,),
        in_specs=[
            pl.BlockSpec((None, 1, batch_tile), lambda i: (i, 0, 0)),   # x (lane-dense row)
            pl.BlockSpec((H, 1), lambda i: (0, 0)),                     # w_in  (resident)
            pl.BlockSpec((H, 1), lambda i: (0, 0)),                     # b_in  (resident)
            pl.BlockSpec((L, H, H), lambda i: (0, 0, 0)),               # w_hid (resident)
            pl.BlockSpec((L, H, 1), lambda i: (0, 0, 0)),               # b_hid (resident)
            pl.BlockSpec((1, H), lambda i: (0, 0)),                     # w_out (resident)
            pl.BlockSpec(memory_space=pltpu.MemorySpace.SMEM),          # b_out scalar
        ],
        out_specs=pl.BlockSpec((None, 1, batch_tile), lambda i: (i, 0, 0)),
        compiler_params=pltpu.CompilerParams(**compiler_kwargs),
    )(x_rows, params["w_in"], params["b_in"], params["w_hid"], params["b_hid"],
      params["w_out"], params["b_out"])

    return out_rows.reshape(padded_B, 1)[:B]


def init_params(key, num_hidden_layers, num_neurons):
    """Deterministic init mimicking nn.Linear's U(-1/sqrt(fan_in), 1/sqrt(fan_in)).
    Weights kept in the PyTorch (out_features, in_features) layout."""
    H, L = num_neurons, num_hidden_layers
    ks = jax.random.split(key, 6)

    def uni(k, shape, fan_in):
        bound = 1.0 / jnp.sqrt(jnp.float32(fan_in))
        return jax.random.uniform(k, shape, jnp.float32, -bound, bound)

    return {
        "w_in": uni(ks[0], (H, 1), 1),
        "b_in": uni(ks[1], (H, 1), 1),
        "w_hid": uni(ks[2], (L, H, H), H),
        "b_hid": uni(ks[3], (L, H, 1), H),
        "w_out": uni(ks[4], (1, H), H),
        "b_out": uni(ks[5], (1,), H),
    }


def fcn_reference(x, params):
    """Pure-JAX reference of the PyTorch forward (dropout_rate=0.0, swish)."""
    h = x @ params["w_in"].T + params["b_in"][:, 0]
    h = h * jax.nn.sigmoid(h)
    for l in range(params["w_hid"].shape[0]):
        h = h @ params["w_hid"][l].T + params["b_hid"][l, :, 0]
        h = h * jax.nn.sigmoid(h)
    return h @ params["w_out"].T + params["b_out"]


if __name__ == "__main__":
    NUM_HIDDEN_LAYERS = 2
    NUM_NEURONS = 32
    BATCH = 600   # deliberately not a multiple of batch_tile (exercises padding + 3 grid steps)

    key = jax.random.PRNGKey(0)
    k_param, k_x = jax.random.split(key)
    params = init_params(k_param, NUM_HIDDEN_LAYERS, NUM_NEURONS)
    x = jax.random.normal(k_x, (BATCH, 1), jnp.float32)

    out = fcn_forward(x, params, batch_tile=256)
    out = jax.block_until_ready(out)

    ref = fcn_reference(x, params)
    assert out.shape == (BATCH, 1)
    assert jnp.allclose(out, ref, atol=1e-4, rtol=1e-4), "mismatch vs reference"

    # TODO(synk): nonzero dropout_rate (training mode) not implemented; nn.Dropout(0.0) is identity.
    print("KERNEL_OK")
</pallas_src>

<mosaic_0001>
module attributes {stable_mosaic.version = 11 : i64} {
  func.func @fcn_kernel(%arg0: i32, %arg1: memref<1x1x256xf32, #tpu.memory_space<vmem>>, %arg2: memref<32x1xf32, #tpu.memory_space<vmem>>, %arg3: memref<32x1xf32, #tpu.memory_space<vmem>>, %arg4: memref<2x32x32xf32, #tpu.memory_space<vmem>>, %arg5: memref<2x32x1xf32, #tpu.memory_space<vmem>>, %arg6: memref<1x32xf32, #tpu.memory_space<vmem>>, %arg7: memref<1xf32, #tpu.memory_space<smem>>, %arg8: memref<1x1x256xf32, #tpu.memory_space<vmem>>) attributes {dimension_semantics = [#tpu.dimension_semantics<parallel>], iteration_bounds = array<i64: 3>, scalar_prefetch = 0 : i64, scratch_operands = 0 : i64, tpu.core_type = #tpu.core_type<tc>, window_params = [{transform_indices = @transform_0, window_bounds = array<i64: 1, 1, 256>}, {pipeline_mode = #tpu.pipeline_mode<synchronous>, transform_indices = @transform_1, window_bounds = array<i64: 32, 1>}, {pipeline_mode = #tpu.pipeline_mode<synchronous>, transform_indices = @transform_2, window_bounds = array<i64: 32, 1>}, {pipeline_mode = #tpu.pipeline_mode<synchronous>, transform_indices = @transform_3, window_bounds = array<i64: 2, 32, 32>}, {pipeline_mode = #tpu.pipeline_mode<synchronous>, transform_indices = @transform_4, window_bounds = array<i64: 2, 32, 1>}, {pipeline_mode = #tpu.pipeline_mode<synchronous>, transform_indices = @transform_5, window_bounds = array<i64: 1, 32>}, {transform_indices = @transform_6, window_bounds = array<i64: 1>}, {transform_indices = @transform_7, window_bounds = array<i64: 1, 1, 256>}]} {
    %c0 = arith.constant 0 : index
    %c0_0 = arith.constant 0 : index
    %c0_1 = arith.constant 0 : index
    %0 = vector.load %arg1[%c0, %c0_0, %c0_1] : memref<1x1x256xf32, #tpu.memory_space<vmem>>, vector<1x1x256xf32>
    %1 = vector.shape_cast %0 : vector<1x1x256xf32> to vector<1x256xf32>
    %c0_2 = arith.constant 0 : index
    %c0_3 = arith.constant 0 : index
    %2 = vector.load %arg2[%c0_2, %c0_3] : memref<32x1xf32, #tpu.memory_space<vmem>>, vector<32x1xf32>
    %3 = vector.broadcast %2 : vector<32x1xf32> to vector<32x256xf32>
    %4 = vector.broadcast %1 : vector<1x256xf32> to vector<32x256xf32>
    %5 = arith.mulf %3, %4 : vector<32x256xf32>
    %c0_4 = arith.constant 0 : index
    %c0_5 = arith.constant 0 : index
    %6 = vector.load %arg3[%c0_4, %c0_5] : memref<32x1xf32, #tpu.memory_space<vmem>>, vector<32x1xf32>
    %7 = vector.broadcast %6 : vector<32x1xf32> to vector<32x256xf32>
    %8 = arith.addf %5, %7 : vector<32x256xf32>
    %cst = arith.constant 0.000000e+00 : f32
    %9 = vector.broadcast %cst : f32 to vector<32x256xf32>
    %10 = arith.subf %9, %8 : vector<32x256xf32>
    %11 = math.exp %10 : vector<32x256xf32>
    %cst_6 = arith.constant 1.000000e+00 : f32
    %12 = vector.broadcast %cst_6 : f32 to vector<32x256xf32>
    %13 = arith.addf %12, %11 : vector<32x256xf32>
    %14 = tpu.reciprocal %13 : vector<32x256xf32> -> vector<32x256xf32>
    %15 = arith.mulf %8, %14 : vector<32x256xf32>
    %c0_7 = arith.constant 0 : index
    %c0_8 = arith.constant 0 : index
    %c0_9 = arith.constant 0 : index
    %16 = vector.load %arg4[%c0_7, %c0_8, %c0_9] : memref<2x32x32xf32, #tpu.memory_space<vmem>>, vector<1x32x32xf32>
    %17 = vector.shape_cast %16 : vector<1x32x32xf32> to vector<32x32xf32>
    %cst_10 = arith.constant dense<0.000000e+00> : vector<32x256xf32>
    %18 = tpu.matmul %17, %15, %cst_10 {dimension_numbers = #tpu.dot_dimension_numbers<[1], [0], [0], [1], [0, 0, 1, 1], [], []>} : vector<32x32xf32>, vector<32x256xf32>, vector<32x256xf32> -> vector<32x256xf32>
    %c0_11 = arith.constant 0 : index
    %c0_12 = arith.constant 0 : index
    %c0_13 = arith.constant 0 : index
    %19 = vector.load %arg5[%c0_11, %c0_12, %c0_13] : memref<2x32x1xf32, #tpu.memory_space<vmem>>, vector<1x32x1xf32>
    %20 = vector.shape_cast %19 : vector<1x32x1xf32> to vector<32x1xf32>
    %21 = vector.broadcast %20 : vector<32x1xf32> to vector<32x256xf32>
    %22 = arith.addf %18, %21 : vector<32x256xf32>
    %cst_14 = arith.constant 0.000000e+00 : f32
    %23 = vector.broadcast %cst_14 : f32 to vector<32x256xf32>
    %24 = arith.subf %23, %22 : vector<32x256xf32>
    %25 = math.exp %24 : vector<32x256xf32>
    %cst_15 = arith.constant 1.000000e+00 : f32
    %26 = vector.broadcast %cst_15 : f32 to vector<32x256xf32>
    %27 = arith.addf %26, %25 : vector<32x256xf32>
    %28 = tpu.reciprocal %27 : vector<32x256xf32> -> vector<32x256xf32>
    %29 = arith.mulf %22, %28 : vector<32x256xf32>
    %c1 = arith.constant 1 : index
    %c0_16 = arith.constant 0 : index
    %c0_17 = arith.constant 0 : index
    %30 = vector.load %arg4[%c1, %c0_16, %c0_17] : memref<2x32x32xf32, #tpu.memory_space<vmem>>, vector<1x32x32xf32>
    %31 = vector.shape_cast %30 : vector<1x32x32xf32> to vector<32x32xf32>
    %cst_18 = arith.constant dense<0.000000e+00> : vector<32x256xf32>
    %32 = tpu.matmul %31, %29, %cst_18 {dimension_numbers = #tpu.dot_dimension_numbers<[1], [0], [0], [1], [0, 0, 1, 1], [], []>} : vector<32x32xf32>, vector<32x256xf32>, vector<32x256xf32> -> vector<32x256xf32>
    %c1_19 = arith.constant 1 : index
    %c0_20 = arith.constant 0 : index
    %c0_21 = arith.constant 0 : index
    %33 = vector.load %arg5[%c1_19, %c0_20, %c0_21] : memref<2x32x1xf32, #tpu.memory_space<vmem>>, vector<1x32x1xf32>
    %34 = vector.shape_cast %33 : vector<1x32x1xf32> to vector<32x1xf32>
    %35 = vector.broadcast %34 : vector<32x1xf32> to vector<32x256xf32>
    %36 = arith.addf %32, %35 : vector<32x256xf32>
    %cst_22 = arith.constant 0.000000e+00 : f32
    %37 = vector.broadcast %cst_22 : f32 to vector<32x256xf32>
    %38 = arith.subf %37, %36 : vector<32x256xf32>
    %39 = math.exp %38 : vector<32x256xf32>
    %cst_23 = arith.constant 1.000000e+00 : f32
    %40 = vector.broadcast %cst_23 : f32 to vector<32x256xf32>
    %41 = arith.addf %40, %39 : vector<32x256xf32>
    %42 = tpu.reciprocal %41 : vector<32x256xf32> -> vector<32x256xf32>
    %43 = arith.mulf %36, %42 : vector<32x256xf32>
    %c0_24 = arith.constant 0 : index
    %c0_25 = arith.constant 0 : index
    %44 = vector.load %arg6[%c0_24, %c0_25] : memref<1x32xf32, #tpu.memory_space<vmem>>, vector<1x32xf32>
    %cst_26 = arith.constant dense<0.000000e+00> : vector<1x256xf32>
    %45 = tpu.matmul %44, %43, %cst_26 {dimension_numbers = #tpu.dot_dimension_numbers<[1], [0], [0], [1], [0, 0, 1, 1], [], []>} : vector<1x32xf32>, vector<32x256xf32>, vector<1x256xf32> -> vector<1x256xf32>
    %c0_27 = arith.constant 0 : index
    %46 = memref.load %arg7[%c0_27] : memref<1xf32, #tpu.memory_space<smem>>
    %47 = vector.broadcast %46 : f32 to vector<1x256xf32>
    %48 = arith.addf %45, %47 : vector<1x256xf32>
    %c0_28 = arith.constant 0 : index
    %c0_29 = arith.constant 0 : index
    %c0_30 = arith.constant 0 : index
    %49 = vector.load %arg8[%c0_28, %c0_29, %c0_30] : memref<1x1x256xf32, #tpu.memory_space<vmem>>, vector<1x1x256xf32>
    %50 = vector.shape_cast %49 : vector<1x1x256xf32> to vector<1x256xf32>
    %51 = vector.shape_cast %48 : vector<1x256xf32> to vector<1x1x256xf32>
    tpu.vector_store %arg8[%c0_28, %c0_29, %c0_30], %51 {strides = array<i32>} : memref<1x1x256xf32, #tpu.memory_space<vmem>>, vector<1x1x256xf32>,
    return
  }
  func.func @transform_0(%arg0: i32) -> (i32, i32, i32) {
    %c0_i32 = arith.constant 0 : i32
    %c0_i32_0 = arith.constant 0 : i32
    %c0_i32_1 = arith.constant 0 : i32
    return %arg0, %c0_i32, %c0_i32_0 : i32, i32, i32
  }
  func.func @transform_1(%arg0: i32) -> (i32, i32) {
    %c0_i32 = arith.constant 0 : i32
    %c0_i32_0 = arith.constant 0 : i32
    %c0_i32_1 = arith.constant 0 : i32
    return %c0_i32, %c0_i32_0 : i32, i32
  }
  func.func @transform_2(%arg0: i32) -> (i32, i32) {
    %c0_i32 = arith.constant 0 : i32
    %c0_i32_0 = arith.constant 0 : i32
    %c0_i32_1 = arith.constant 0 : i32
    return %c0_i32, %c0_i32_0 : i32, i32
  }
  func.func @transform_3(%arg0: i32) -> (i32, i32, i32) {
    %c0_i32 = arith.constant 0 : i32
    %c0_i32_0 = arith.constant 0 : i32
    %c0_i32_1 = arith.constant 0 : i32
    %c0_i32_2 = arith.constant 0 : i32
    return %c0_i32, %c0_i32_0, %c0_i32_1 : i32, i32, i32
  }
  func.func @transform_4(%arg0: i32) -> (i32, i32, i32) {
    %c0_i32 = arith.constant 0 : i32
    %c0_i32_0 = arith.constant 0 : i32
    %c0_i32_1 = arith.constant 0 : i32
    %c0_i32_2 = arith.constant 0 : i32
    return %c0_i32, %c0_i32_0, %c0_i32_1 : i32, i32, i32
  }
  func.func @transform_5(%arg0: i32) -> (i32, i32) {
    %c0_i32 = arith.constant 0 : i32
    %c0_i32_0 = arith.constant 0 : i32
    %c0_i32_1 = arith.constant 0 : i32
    return %c0_i32, %c0_i32_0 : i32, i32
  }
  func.func @transform_6(%arg0: i32) -> i32 {
    %c0_i32 = arith.constant 0 : i32
    %c0_i32_0 = arith.constant 0 : i32
    return %c0_i32 : i32
  }
  func.func @transform_7(%arg0: i32) -> (i32, i32, i32) {
    %c0_i32 = arith.constant 0 : i32
    %c0_i32_0 = arith.constant 0 : i32
    %c0_i32_1 = arith.constant 0 : i32
    return %arg0, %c0_i32, %c0_i32_0 : i32, i32, i32
  }
}

</mosaic_0001>

<bundles_post_ra>
// kernel: tpu_custom_call.1
= control target key start
LH: loop header
LB: loop body
LE: loop exit
PB: predicated region body
PF: predicated region fallthrough
CT: control target
= control target key end

     0   :  { %s1451_s0 = inlined_call_operand.vmem [shape: f32[3,1,256], index: 0, kind: input, shape index: {}]   ;;  %s1452_s1 = inlined_call_operand.vmem [shape: f32[32,1], index: 1, kind: input, shape index: {}]   ;;  %s1453_s2 = inlined_call_operand.vmem [shape: f32[32,1], index: 2, kind: input, shape index: {}]   ;;  %s1454_s3 = inlined_call_operand.vmem [shape: f32[2,32,32], index: 3, kind: input, shape index: {}]   ;;  %s1455_s4 = inlined_call_operand.vmem [shape: f32[2,32,1], index: 4, kind: input, shape index: {}]   ;;  %s1456_s5 = inlined_call_operand.vmem [shape: f32[1,32], index: 5, kind: input, shape index: {}]   ;;  %s1457_s6 = inlined_call_operand.<no memory space> [shape: f32[1], index: 6, kind: input, shape index: {}]   ;;  %s1458_s7 = inlined_call_operand.hbm [shape: f32[3,1,256], index: 7, kind: output, shape index: {}]  }
   0x1   :  { %12 = sst [smem:[#allocation2]] %s1457_s6 }
   0x2   :  { %13 = vsyncpa [#allocation4], 0 }
   0x3   :  { %15 = vsyncpa [#allocation4 + $0x1], 0  ;;  %s1208_s26 = smov 0   ;;  %s1210_s27 = smov 0  }
   0x4   :  { %s1212_s28 = smov 0   ;;  %s1214_s29 = smov 0  }
   0x5 LB: > { %s1229_s6 = sadd.s32 4294967295, %s1159_s29   ;;  %s930_s30 = sadd.s32 4294967294, %s1159_s29   ;;  %s1159_s29 = sphi %s1214_s29, %s1464_s29   ;;  %s1155_s28 = sphi %s1212_s28, %s1463_s28   ;;  %s1151_s27 = sphi %s1210_s27, %s1462_s27   ;;  %s1147_s26 = sphi %s1208_s26, %s1461_s26  }
   0x6   : > { %s1233_s8 = sadd.s32 1, %s1159_s29   ;;  %s180_s9 = sadd.s32 1, %s1155_s28 }
   0x7   : > { %s177_s10 = ssub.s32 %s1159_s29, %s1233_s8  ;;  %p190_p0 = scmp.ne.s32.totalorder %s1155_s28, %s1151_s27 }
   0x8   : > { %p178_p1 = scmp.eq.s32.totalorder %s177_s10, 0  ;;  %p191_p2 = scmp.eq.s32.totalorder %s1229_s6, 2 }
   0x9   : > { %p196_p3 = scmp.ne.s32.totalorder %s1151_s27, %s1147_s26  ;;  %p197_p4 = scmp.eq.s32.totalorder %s930_s30, 2 }
   0xa   : > { %s1244_s11 = scalar_select %p178_p1, %s1155_s28, %s180_s9  }
   0xb   : > { %p1246_p5 = por %p191_p2, %p190_p0  ;;  %p1250_p6 = por %p197_p4, %p196_p3 }
   0xc   : > { %p933_p7 = scmp.ge.s32.totalorder %s1159_s29, 1  ;;  %p240_p8 = scmp.lt.s32.totalorder %s1159_s29, 4 }
   0xe   : > { %p241_p9 = pnand %p933_p7, %p240_p8 }
   0xf   : > { %p271_p10 = scmp.lt.s32.totalorder (!%p241_p9), %s1229_s6, 2  ;;  %s757_s24 = sld [smem:[#allocation2]] (!%p241_p9) }
  0x10   : > { %244 = sbr.rel (%p241_p9) target bundleno = 924 (0x39c), region = 48  ;;  %s268_s25 = sand.u32 (!%p241_p9), 1, %s1151_s27  }
  0x11   : > { %s934_s30 = sshll.u32 (!%p241_p9), %s268_s25, 1  ;;  %s958_s9 = sshll.u32 (!%p241_p9), %s1229_s6, 5 }
  0x12   : > { %s270_s10 = scalar_lea.vmem (!%p241_p9), [#allocation3], %s934_s30  ;;  %s857_s18 = scalar_lea.sflag (!%p241_p9), [#allocation4], %s268_s25 }
  0x13   : > { %s871_s14 = sshll.u32 (!%p241_p9), %s270_s10, 4  ;;  %s872_s14 = int_to_ptr.vmem [resolvable:$true] %s871_s14 }
  0x14   : > { %s1099_s19 = scalar_lea.vmem (!%p241_p9), %s872_s14, 32 }
  0x15   : > { %v322_v0 = vld [vmem:[%s1453_s2 + $0x18] sm:$0xff]  ;;  %v1161_v2 = vmov 0   ;;  %v278_v3 = vld [vmem:[%s1452_s1 + $0x10] sm:$0xff]  ;;  %v277_v4 = vld [vmem:[%s1452_s1 + $0x8] sm:$0xff]  ;;  %v1162_v17 = vmov 0.0   ;;  %s272_s16 = scalar_select %p271_p10, %s1229_s6, 2  ;;  %v301_v18 = vlaneseq }
  0x16   : > { %v279_v1 = vld [vmem:[%s1452_s1 + $0x18] sm:$0xff]  ;;  %1002 = vset.pattern.permute.xlu1 %v1161_v2  ;;  %1001 = vset.pattern.permute.xlu0 %v1161_v2  ;;  %v321_v5 = vld [vmem:[%s1453_s2 + $0x10] sm:$0xff]  ;;  %v276_v6 = vld [vmem:[%s1452_s1] sm:$0xff]  ;;  %vm427_vm0 = vcmask 261120   ;;  %p1100_p11 = scmp.ne.s32.totalorder %s872_s14, %s1099_s19 }
  0x17   : > { %340 = vperm.xlu1 %1002, %v322_v0   ;;  %297 = vperm.xlu0 %1001, %v279_v1   ;;  %v320_v7 = vld [vmem:[%s1453_s2 + $0x8] sm:$0xff]  ;;  %v319_v8 = vld [vmem:[%s1453_s2] sm:$0xff]  ;;  %v406_v9 = vld [vmem:[%s1455_s4 + $0x18] sm:$0xff]  ;;  %s935_s17 = sshll.u32 %s272_s16, 1  ;;  %v1309_v19 = vshrl.u32 %v301_v18, 7  ;;  %vm853_vm1 = vcmp.lt.s32.totalorder %v301_v18, 256 }
  0x18   : > { %v405_v10 = vld [vmem:[%s1455_s4 + $0x10] sm:$0xff]  ;;  %v404_v11 = vld [vmem:[%s1455_s4 + $0x8] sm:$0xff]  ;;  %v403_v12 = vld [vmem:[%s1455_s4] sm:$0xff]  ;;  %504 = vmatprep.mubr.f32.mxu0 %v1162_v17  ;;  %683 = vmatprep.mubr.f32.mxu1 %v1162_v17  ;;  %s274_s20 = scalar_lea.vmem %s1451_s0, %s935_s17  ;;  %s869_s17 = scalar_lea.hbm %s1458_s7, %s958_s9 }
  0x19   : > { %v947_v13 = vld [vmem:[%s1455_s4 + $0x38] sm:$0xff]  ;;  %v946_v14 = vld [vmem:[%s1455_s4 + $0x30] sm:$0xff]  ;;  %v945_v15 = vld [vmem:[%s1455_s4 + $0x28] sm:$0xff]  ;;  %v303_v20 = vsub.s32 0, %v1309_v19  ;;  %v307_v21 = vsub.s32 1, %v1309_v19  ;;  %p1101_p12 = pnand %p1100_p11, %p1246_p5 }
  0x1a   : > { %v944_v16 = vld [vmem:[%s1455_s4 + $0x20] sm:$0xff] }
  0x1b   : > { %292 = vperm.xlu0 %1001, %v278_v3   ;;  %287 = vperm.xlu1 %1002, %v277_v4   ;;  %v275_v22 = vld [vmem:[%s274_s20] sm:$0x3]  ;;  %p1102_p13 = pneg %p1101_p12  ;;  %s1164_s20 = smov [#allocation3]  }
  0x1c   : > { %v304_v23 = vrot.slane %v275_v22, %v303_v20  ;;  %v308_v24 = vrot.slane %v275_v22, %v307_v21  ;;  %s1103_s6 = sshll.u32 %s1164_s20, 4  ;;  %s1104_s6 = int_to_ptr.vmem [resolvable:$false] %s1103_s6 }
  0x1d   : > { %s1105_s21 = scalar_lea.vmem %s1104_s6, 64  ;;  %p1106_p0 = scmp.lt.s32.totalorder %s872_s14, %s1104_s6 }
  0x1e   : > { %p1107_p1 = scmp.lt.s32.totalorder %s1105_s21, %s1099_s19 }
  0x1f   : > { %335 = vperm.xlu0 %1001, %v321_v5   ;;  %282 = vperm.xlu1 %1002, %v276_v6  }
  0x20   : > { %p1108_p2 = por %p1107_p1, %p1106_p0 }
  0x22   : > { %p1109_p3 = pnand %p1108_p2, %p1102_p13 }
  0x23   : > { %330 = vperm.xlu0 %1001, %v320_v7   ;;  %325 = vperm.xlu1 %1002, %v319_v8  }
  0x27   : > { %424 = vperm.xlu0 %1001, %v406_v9   ;;  %419 = vperm.xlu1 %1002, %v405_v10  }
  0x2b   : > { %414 = vperm.xlu0 %1001, %v404_v11   ;;  %409 = vperm.xlu1 %1002, %v403_v12  }
  0x2f   : > { %604 = vperm.xlu0 %1001, %v947_v13   ;;  %599 = vperm.xlu1 %1002, %v946_v14  }
  0x33   : > { %594 = vperm.xlu0 %1001, %v945_v15   ;;  %589 = vperm.xlu1 %1002, %v944_v16  }
  0x92   : > { %v341_v25 = vpop.permute.xlu1 %340  ;;  %v298_v26 = vpop.permute.xlu0 %297 }
  0x93   : > { %v317_v27 = vmul.f32 %v304_v23, %v298_v26  ;;  %v318_v28 = vmul.f32 %v308_v24, %v298_v26 }
  0x95   : > { %v1316_v29 = vadd.f32 %v341_v25, %v318_v28  ;;  %v1318_v30 = vadd.f32 %v341_v25, %v317_v27 }
  0x96   : > { %v293_v31 = vpop.permute.xlu0 %292  ;;  %v288_v32 = vpop.permute.xlu1 %287 }
  0x97   : > { %v358_v33 = vsub.f32 0.0, %v1316_v29  ;;  %v357_v34 = vsub.f32 0.0, %v1318_v30  ;;  %v315_v35 = vmul.f32 %v304_v23, %v293_v31  ;;  %v316_v36 = vmul.f32 %v308_v24, %v293_v31 }
  0x98   : > { %v313_v43 = vmul.f32 %v304_v23, %v288_v32  ;;  %v314_v44 = vmul.f32 %v308_v24, %v288_v32 }
  0x99   : > { %v373_v39 = vmul.f32 1.442695, %v358_v33  ;;  %v371_v40 = vmul.f32 1.442695, %v357_v34 }
  0x9a   : > { %v336_v37 = vpop.permute.xlu0 %335  ;;  %v283_v38 = vpop.permute.xlu1 %282 }
  0x9b   : > { %v1322_v41 = vadd.f32 %v336_v37, %v315_v35  ;;  %v1324_v42 = vadd.f32 %v336_v37, %v316_v36  ;;  %1003 = vpow2.f32 %v373_v39  ;;  %v311_v47 = vmul.f32 %v304_v23, %v283_v38  ;;  %v400_v37 = vld [vmem:[%s1454_s3 + $0x8] sm:$0xff]  ;;  %v402_v39 = vld [vmem:[%s1454_s3 + $0x18] sm:$0xff] }
  0x9c   : > { %1005 = vpow2.f32 %v371_v40  ;;  %v312_v48 = vmul.f32 %v308_v24, %v283_v38  ;;  %v401_v38 = vld [vmem:[%s1454_s3 + $0x10] sm:$0xff] }
  0x9d   : > { %v355_v45 = vsub.f32 0.0, %v1322_v41  ;;  %v356_v46 = vsub.f32 0.0, %v1324_v42 }
  0x9e   : > { %v331_v49 = vpop.permute.xlu0 %330  ;;  %v326_v50 = vpop.permute.xlu1 %325 }
  0x9f   : > { %v367_v51 = vmul.f32 1.442695, %v355_v45  ;;  %v369_v52 = vmul.f32 1.442695, %v356_v46  ;;  %v345_v53 = vadd.f32 %v331_v49, %v313_v43  ;;  %v346_v54 = vadd.f32 %v331_v49, %v314_v44 }
  0xa0   : > { %v343_v55 = vadd.f32 %v326_v50, %v311_v47  ;;  %v344_v56 = vadd.f32 %v326_v50, %v312_v48 }
  0xa1   : > { %1007 = vpow2.f32 %v367_v51  ;;  %v353_v57 = vsub.f32 0.0, %v345_v53  ;;  %v354_v58 = vsub.f32 0.0, %v346_v54 }
  0xa2   : > { %1009 = vpow2.f32 %v369_v52  ;;  %v351_v59 = vsub.f32 0.0, %v343_v55  ;;  %v352_v60 = vsub.f32 0.0, %v344_v56  ;;  %v420_v40 = vpop.permute.xlu1 %419 }
  0xa3   : > { %v363_v61 = vmul.f32 1.442695, %v353_v57  ;;  %v365_v62 = vmul.f32 1.442695, %v354_v58 }
  0xa4   : > { %v359_v63 = vmul.f32 1.442695, %v351_v59  ;;  %v361_v0 = vmul.f32 1.442695, %v352_v60 }
  0xa5   : > { %1011 = vpow2.f32 %v363_v61 }
  0xa6   : > { %1013 = vpow2.f32 %v365_v62  ;;  %v410_v43 = vpop.permute.xlu1 %409 }
  0xa7   : > { %1015 = vpow2.f32 %v359_v63 }
  0xa8   : > { %1017 = vpow2.f32 %v361_v0  ;;  %v1004_v1 = vpop.eup %1003 }
  0xa9   : > { %v1006_v2 = vpop.eup %1005  ;;  %v382_v3 = vadd.f32 1.0, %v1004_v1 }
  0xaa   : > { %v381_v4 = vadd.f32 1.0, %v1006_v2 }
  0xab   : > { %1019 = vrcp.f32 %v382_v3 }
  0xac   : > { %1021 = vrcp.f32 %v381_v4 }
  0xae   : > { %v1008_v5 = vpop.eup %1007 }
  0xaf   : > { %v1010_v6 = vpop.eup %1009  ;;  %v379_v7 = vadd.f32 1.0, %v1008_v5 }
  0xb0   : > { %v380_v8 = vadd.f32 1.0, %v1010_v6 }
  0xb1   : > { %1023 = vrcp.f32 %v379_v7 }
  0xb2   : > { %v1012_v9 = vpop.eup %1011  ;;  %1025 = vrcp.f32 %v380_v8 }
  0xb3   : > { %v1014_v10 = vpop.eup %1013  ;;  %v377_v11 = vadd.f32 1.0, %v1012_v9 }
  0xb4   : > { %v1016_v12 = vpop.eup %1015  ;;  %v378_v13 = vadd.f32 1.0, %v1014_v10 }
  0xb5   : > { %v1018_v14 = vpop.eup %1017  ;;  %1027 = vrcp.f32 %v377_v11  ;;  %v375_v15 = vadd.f32 1.0, %v1016_v12 }
  0xb6   : > { %1029 = vrcp.f32 %v378_v13  ;;  %v376_v16 = vadd.f32 1.0, %v1018_v14 }
  0xb7   : > { %1031 = vrcp.f32 %v375_v15 }
  0xb8   : > { %1033 = vrcp.f32 %v376_v16  ;;  %v1020_v20 = vpop.eup %1019 }
  0xb9   : > { %v1022_v21 = vpop.eup %1021  ;;  %v398_v22 = vmul.f32 %v1020_v20, %v1316_v29 }
  0xba   : > { %v397_v23 = vmul.f32 %v1022_v21, %v1318_v30  ;;  %v399_v30 = vld [vmem:[%s1454_s3] sm:$0xff] }
  0xbb   : > { %464 = vmatprep.subr.mxu0 %v398_v22 }
  0xbc   : > { %465 = vmatpush1.msra.mxu0 %v397_v23 }
  0xbe   : > { %v1024_v24 = vpop.eup %1023 }
  0xbf   : > { %v1026_v25 = vpop.eup %1025  ;;  %v395_v26 = vmul.f32 %v1024_v24, %v1322_v41  ;;  %v425_v41 = vpop.permute.xlu0 %424 }
  0xc0   : > { %v396_v27 = vmul.f32 %v1026_v25, %v1324_v42 }
  0xc2   : > { %v1028_v28 = vpop.eup %1027  ;;  %466 = vmatprep.subr.mxu0 %v396_v27 }
  0xc3   : > { %v1030_v31 = vpop.eup %1029  ;;  %v393_v32 = vmul.f32 %v1028_v28, %v345_v53  ;;  %467 = vmatpush1.msra.mxu0 %v395_v26  ;;  %v415_v47 = vpop.permute.xlu0 %414 }
  0xc4   : > { %v1032_v33 = vpop.eup %1031  ;;  %v394_v34 = vmul.f32 %v1030_v31, %v346_v54 }
  0xc5   : > { %v1034_v35 = vpop.eup %1033  ;;  %v391_v29 = vmul.f32 %v1032_v33, %v343_v55 }
  0xc6   : > { %v392_v36 = vmul.f32 %v1034_v35, %v344_v56  ;;  %468 = vmatprep.subr.mxu0 %v394_v34 }
  0xc7   : > { %469 = vmatpush1.msra.mxu0 %v393_v32 }
  0xc8   : > { %470 = vmatprep.subr.mxu0 %v392_v36 }
  0xc9   : > { %471 = vmatpush1.msra.mxu0 %v391_v29 }
  0xca   : > { %936 = vmatmul.mubr.msk.f32.vlgmr.msra.gmra.mxu0 %vm427_vm0, %v399_v30 }
  0xcb   : > { %510 = vmatprep.mubr.f32.mxu0 %v1162_v17 }
  0xce   : > { %937 = vmatmul.mubr.msk.f32.gmra.mxu0 %vm427_vm0, %v400_v37 }
  0xcf   : > { %516 = vmatprep.mubr.f32.mxu0 %v1162_v17 }
  0xd2   : > { %938 = vmatmul.mubr.msk.f32.gmra.mxu0 %vm427_vm0, %v401_v38 }
  0xd3   : > { %522 = vmatprep.mubr.f32.mxu0 %v1162_v17 }
  0xd6   : > { %939 = vmatmul.mubr.msk.f32.gmra.mxu0 %vm427_vm0, %v402_v39 }
  0xd7   : > { %826 = vmatprep.mubr.f32.mxu0 %v1162_v17 }
 0x18a   : > { %v506_v42 = vpop.f32.mrf.mxu0 }
 0x18b   : > { %v1362_v55 = vadd.f32 %v506_v42, %v410_v43 }
 0x18c   : > { %v508_v44 = vpop.f32.mrf.mxu0 }
 0x18d   : > { %v1352_v45 = vadd.f32 %v508_v44, %v410_v43  ;;  %v529_v1 = vsub.f32 0.0, %v1362_v55 }
 0x18e   : > { %v512_v46 = vpop.f32.mrf.mxu0 }
 0x18f   : > { %v530_v49 = vsub.f32 0.0, %v1352_v45  ;;  %v1357_v51 = vadd.f32 %v512_v46, %v415_v47  ;;  %v537_v10 = vmul.f32 1.442695, %v529_v1 }
 0x190   : > { %v514_v48 = vpop.f32.mrf.mxu0 }
 0x191   : > { %v1355_v50 = vadd.f32 %v514_v48, %v415_v47  ;;  %v539_v57 = vmul.f32 1.442695, %v530_v49  ;;  %v531_v60 = vsub.f32 0.0, %v1357_v51  ;;  %v940_v48 = vld [vmem:[%s1454_s3 + $0x20] sm:$0xff]  ;;  %v941_v49 = vld [vmem:[%s1454_s3 + $0x28] sm:$0xff] }
 0x192   : > { %v518_v52 = vpop.f32.mrf.mxu0 }
 0x193   : > { %v532_v53 = vsub.f32 0.0, %v1355_v50  ;;  %v1360_v54 = vadd.f32 %v518_v52, %v420_v40  ;;  %1035 = vpow2.f32 %v539_v57  ;;  %v541_v7 = vmul.f32 1.442695, %v531_v60  ;;  %v605_v52 = vpop.permute.xlu0 %604 }
 0x194   : > { %v520_v56 = vpop.f32.mrf.mxu0 }
 0x195   : > { %v533_v58 = vsub.f32 0.0, %v1360_v54  ;;  %v521_v59 = vadd.f32 %v520_v56, %v420_v40  ;;  %v543_v61 = vmul.f32 1.442695, %v532_v53 }
 0x196   : > { %v524_v62 = vpop.f32.mrf.mxu0 }
 0x197   : > { %v534_v63 = vsub.f32 0.0, %v521_v59  ;;  %v525_v0 = vadd.f32 %v524_v62, %v425_v41  ;;  %v545_v2 = vmul.f32 1.442695, %v533_v58  ;;  %1037 = vpow2.f32 %v543_v61  ;;  %v595_v58 = vpop.permute.xlu0 %594 }
 0x198   : > { %v526_v3 = vpop.f32.mrf.mxu0 }
 0x199   : > { %v547_v4 = vmul.f32 1.442695, %v534_v63  ;;  %v535_v5 = vsub.f32 0.0, %v525_v0  ;;  %v527_v6 = vadd.f32 %v526_v3, %v425_v41 }
 0x19b   : > { %1039 = vpow2.f32 %v547_v4  ;;  %v549_v8 = vmul.f32 1.442695, %v535_v5  ;;  %v536_v9 = vsub.f32 0.0, %v527_v6 }
 0x19c   : > { %1041 = vpow2.f32 %v545_v2 }
 0x19d   : > { %1043 = vpow2.f32 %v549_v8  ;;  %v551_v11 = vmul.f32 1.442695, %v536_v9 }
 0x19e   : > { %1045 = vpow2.f32 %v541_v7 }
 0x19f   : > { %1047 = vpow2.f32 %v551_v11 }
 0x1a0   : > { %1049 = vpow2.f32 %v537_v10  ;;  %v1036_v12 = vpop.eup %1035 }
 0x1a1   : > { %v554_v31 = vadd.f32 1.0, %v1036_v12 }
 0x1a4   : > { %v1038_v13 = vpop.eup %1037 }
 0x1a5   : > { %v556_v26 = vadd.f32 1.0, %v1038_v13 }
 0x1a8   : > { %v1040_v14 = vpop.eup %1039 }
 0x1a9   : > { %v1042_v15 = vpop.eup %1041  ;;  %v558_v16 = vadd.f32 1.0, %v1040_v14 }
 0x1aa   : > { %v1044_v20 = vpop.eup %1043  ;;  %v557_v24 = vadd.f32 1.0, %v1042_v15 }
 0x1ab   : > { %v1046_v21 = vpop.eup %1045  ;;  %v559_v22 = vadd.f32 1.0, %v1044_v20  ;;  %1051 = vrcp.f32 %v558_v16 }
 0x1ac   : > { %v1048_v23 = vpop.eup %1047  ;;  %v555_v28 = vadd.f32 1.0, %v1046_v21 }
 0x1ad   : > { %v1050_v25 = vpop.eup %1049  ;;  %v560_v27 = vadd.f32 1.0, %v1048_v23  ;;  %1053 = vrcp.f32 %v559_v22 }
 0x1ae   : > { %v553_v32 = vadd.f32 1.0, %v1050_v25 }
 0x1af   : > { %1055 = vrcp.f32 %v560_v27 }
 0x1b0   : > { %1057 = vrcp.f32 %v557_v24 }
 0x1b1   : > { %1059 = vrcp.f32 %v556_v26 }
 0x1b2   : > { %1061 = vrcp.f32 %v555_v28 }
 0x1b3   : > { %1063 = vrcp.f32 %v554_v31 }
 0x1b4   : > { %1065 = vrcp.f32 %v553_v32 }
 0x1b8   : > { %v1052_v33 = vpop.eup %1051 }
 0x1b9   : > { %v574_v39 = vmul.f32 %v1052_v33, %v521_v59 }
 0x1ba   : > { %v1054_v34 = vpop.eup %1053 }
 0x1bb   : > { %v575_v37 = vmul.f32 %v1054_v34, %v525_v0 }
 0x1bc   : > { %v1056_v35 = vpop.eup %1055 }
 0x1bd   : > { %v1058_v36 = vpop.eup %1057  ;;  %v576_v29 = vmul.f32 %v1056_v35, %v527_v6 }
 0x1be   : > { %v1060_v30 = vpop.eup %1059  ;;  %v573_v41 = vmul.f32 %v1058_v36, %v1360_v54 }
 0x1bf   : > { %v1062_v38 = vpop.eup %1061  ;;  %643 = vmatprep.subr.mxu1 %v576_v29  ;;  %v572_v43 = vmul.f32 %v1060_v30, %v1355_v50  ;;  %v943_v50 = vld [vmem:[%s1454_s3 + $0x38] sm:$0xff] }
 0x1c0   : > { %v1064_v40 = vpop.eup %1063  ;;  %644 = vmatpush1.msra.mxu1 %v575_v37  ;;  %v571_v44 = vmul.f32 %v1062_v38, %v1357_v51  ;;  %v600_v51 = vpop.permute.xlu1 %599 }
 0x1c1   : > { %v1066_v42 = vpop.eup %1065  ;;  %645 = vmatprep.subr.mxu1 %v574_v39  ;;  %v570_v46 = vmul.f32 %v1064_v40, %v1352_v45  ;;  %v942_v45 = vld [vmem:[%s1454_s3 + $0x30] sm:$0xff] }
 0x1c2   : > { %646 = vmatpush1.msra.mxu1 %v573_v41  ;;  %v569_v47 = vmul.f32 %v1066_v42, %v1362_v55 }
 0x1c3   : > { %647 = vmatprep.subr.mxu1 %v572_v43 }
 0x1c4   : > { %648 = vmatpush1.msra.mxu1 %v571_v44  ;;  %v590_v54 = vpop.permute.xlu1 %589 }
 0x1c5   : > { %649 = vmatprep.subr.mxu1 %v570_v46 }
 0x1c6   : > { %650 = vmatpush1.msra.mxu1 %v569_v47 }
 0x1c7   : > { %948 = vmatmul.mubr.msk.f32.vlgmr.msra.gmra.mxu1 %vm427_vm0, %v940_v48 }
 0x1c8   : > { %689 = vmatprep.mubr.f32.mxu1 %v1162_v17 }
 0x1cb   : > { %949 = vmatmul.mubr.msk.f32.gmra.mxu1 %vm427_vm0, %v941_v49 }
 0x1cc   : > { %695 = vmatprep.mubr.f32.mxu1 %v1162_v17 }
 0x1cf   : > { %950 = vmatmul.mubr.msk.f32.gmra.mxu1 %vm427_vm0, %v942_v45 }
 0x1d0   : > { %701 = vmatprep.mubr.f32.mxu1 %v1162_v17 }
 0x1d3   : > { %951 = vmatmul.mubr.msk.f32.gmra.mxu1 %vm427_vm0, %v943_v50 }
 0x287   : > { %v685_v53 = vpop.f32.mrf.mxu1 }
 0x288   : > { %v1401_v1 = vadd.f32 %v685_v53, %v590_v54 }
 0x289   : > { %v687_v55 = vpop.f32.mrf.mxu1 }
 0x28a   : > { %v1391_v56 = vadd.f32 %v687_v55, %v590_v54  ;;  %v708_v11 = vsub.f32 0.0, %v1401_v1 }
 0x28b   : > { %v691_v57 = vpop.f32.mrf.mxu1 }
 0x28c   : > { %v709_v60 = vsub.f32 0.0, %v1391_v56  ;;  %v1396_v17 = vadd.f32 %v691_v57, %v595_v58  ;;  %v716_v23 = vmul.f32 1.442695, %v708_v11 }
 0x28d   : > { %v693_v59 = vpop.f32.mrf.mxu1 }
 0x28e   : > { %v1394_v61 = vadd.f32 %v693_v59, %v595_v58  ;;  %v718_v3 = vmul.f32 1.442695, %v709_v60  ;;  %v710_v6 = vsub.f32 0.0, %v1396_v17  ;;  %v756_v58 = vld [vmem:[%s1456_s5] sm:$0x1] }
 0x28f   : > { %v697_v62 = vpop.f32.mrf.mxu1  ;;  %v1163_v59 = vmov 1966171168  }
 0x290   : > { %v711_v63 = vsub.f32 0.0, %v1394_v61  ;;  %v1399_v0 = vadd.f32 %v697_v62, %v600_v51  ;;  %1067 = vpow2.f32 %v718_v3  ;;  %v720_v20 = vmul.f32 1.442695, %v710_v6 }
 0x291   : > { %v699_v2 = vpop.f32.mrf.mxu1  ;;  %v837_v60 = vunpack.c.l.s4 %v1163_v59 }
 0x292   : > { %v712_v4 = vsub.f32 0.0, %v1399_v0  ;;  %v700_v5 = vadd.f32 %v699_v2, %v600_v51  ;;  %v722_v7 = vmul.f32 1.442695, %v711_v63 }
 0x293   : > { %v703_v8 = vpop.f32.mrf.mxu1 }
 0x294   : > { %v713_v9 = vsub.f32 0.0, %v700_v5  ;;  %v704_v10 = vadd.f32 %v703_v8, %v605_v52  ;;  %v724_v12 = vmul.f32 1.442695, %v712_v4  ;;  %1069 = vpow2.f32 %v722_v7 }
 0x295   : > { %v705_v13 = vpop.f32.mrf.mxu1 }
 0x296   : > { %v726_v14 = vmul.f32 1.442695, %v713_v9  ;;  %v714_v15 = vsub.f32 0.0, %v704_v10  ;;  %v706_v16 = vadd.f32 %v705_v13, %v605_v52 }
 0x298   : > { %1071 = vpow2.f32 %v726_v14  ;;  %v728_v21 = vmul.f32 1.442695, %v714_v15  ;;  %v715_v22 = vsub.f32 0.0, %v706_v16 }
 0x299   : > { %1073 = vpow2.f32 %v724_v12 }
 0x29a   : > { %1075 = vpow2.f32 %v728_v21  ;;  %v730_v24 = vmul.f32 1.442695, %v715_v22 }
 0x29b   : > { %1077 = vpow2.f32 %v720_v20 }
 0x29c   : > { %1079 = vpow2.f32 %v730_v24 }
 0x29d   : > { %1081 = vpow2.f32 %v716_v23  ;;  %v1068_v25 = vpop.eup %1067 }
 0x29e   : > { %v733_v39 = vadd.f32 1.0, %v1068_v25 }
 0x2a1   : > { %v1070_v26 = vpop.eup %1069 }
 0x2a2   : > { %v735_v30 = vadd.f32 1.0, %v1070_v26 }
 0x2a5   : > { %v1072_v27 = vpop.eup %1071 }
 0x2a6   : > { %v1074_v28 = vpop.eup %1073  ;;  %v737_v31 = vadd.f32 1.0, %v1072_v27 }
 0x2a7   : > { %v1076_v32 = vpop.eup %1075  ;;  %v736_v36 = vadd.f32 1.0, %v1074_v28 }
 0x2a8   : > { %v1078_v33 = vpop.eup %1077  ;;  %v738_v34 = vadd.f32 1.0, %v1076_v32  ;;  %1083 = vrcp.f32 %v737_v31 }
 0x2a9   : > { %v1080_v35 = vpop.eup %1079  ;;  %v734_v38 = vadd.f32 1.0, %v1078_v33 }
 0x2aa   : > { %v1082_v29 = vpop.eup %1081  ;;  %v739_v37 = vadd.f32 1.0, %v1080_v35  ;;  %1085 = vrcp.f32 %v738_v34 }
 0x2ab   : > { %v732_v40 = vadd.f32 1.0, %v1082_v29 }
 0x2ac   : > { %1087 = vrcp.f32 %v739_v37 }
 0x2ad   : > { %1089 = vrcp.f32 %v736_v36 }
 0x2ae   : > { %1091 = vrcp.f32 %v735_v30 }
 0x2af   : > { %1093 = vrcp.f32 %v734_v38 }
 0x2b0   : > { %1095 = vrcp.f32 %v733_v39 }
 0x2b1   : > { %1097 = vrcp.f32 %v732_v40 }
 0x2b5   : > { %v1084_v41 = vpop.eup %1083 }
 0x2b6   : > { %v753_v45 = vmul.f32 %v1084_v41, %v700_v5 }
 0x2b7   : > { %v1086_v42 = vpop.eup %1085 }
 0x2b8   : > { %v754_v48 = vmul.f32 %v1086_v42, %v704_v10 }
 0x2b9   : > { %v1088_v43 = vpop.eup %1087 }
 0x2ba   : > { %v1090_v44 = vpop.eup %1089  ;;  %v755_v46 = vmul.f32 %v1088_v43, %v706_v16 }
 0x2bb   : > { %v1092_v47 = vpop.eup %1091  ;;  %v752_v51 = vmul.f32 %v1090_v44, %v1399_v0 }
 0x2bc   : > { %v1094_v49 = vpop.eup %1093  ;;  %786 = vmatprep.subr.mxu0 %v755_v46  ;;  %v751_v53 = vmul.f32 %v1092_v47, %v1394_v61  ;;  %v838_v61 = vunpack.c.0.s8 %v837_v60 }
 0x2bd   : > { %v1096_v50 = vpop.eup %1095  ;;  %787 = vmatpush1.msra.mxu0 %v754_v48  ;;  %v750_v54 = vmul.f32 %v1094_v49, %v1396_v17  ;;  %v758_v17 = vstv %s757_s24 }
 0x2be   : > { %v1098_v52 = vpop.eup %1097  ;;  %788 = vmatprep.subr.mxu0 %v753_v45  ;;  %v749_v55 = vmul.f32 %v1096_v50, %v1391_v56 }
 0x2bf   : > { %789 = vmatpush1.msra.mxu0 %v752_v51  ;;  %v748_v57 = vmul.f32 %v1098_v52, %v1401_v1  ;;  %v841_v1 = vsub.s32 %v838_v61, %v1309_v19 }
 0x2c0   : > { %790 = vmatprep.subr.mxu0 %v751_v53 }
 0x2c1   : > { %791 = vmatpush1.msra.mxu0 %v750_v54 }
 0x2c2   : > { %792 = vmatprep.subr.mxu0 %v749_v55 }
 0x2c3   : > { %793 = vmatpush1.msra.mxu0 %v748_v57 }
 0x2c4   : > { %952 = vmatmul.mubr.msk.f32.vlgmr.msra.gmra.mxu0 %vm427_vm0, %v756_v58 }
 0x384   : > { %v828_v56 = vpop.f32.mrf.mxu0 }
 0x385   : > { %v829_v63 = vadd.f32 %v828_v56, %v758_v17 }
 0x386   : > { %v830_v62 = vpop.f32.mrf.mxu0 }
 0x387   : > { %v831_v0 = vadd.f32 %v830_v62, %v758_v17 }
 0x389   : > { %v835_v2 = vcombine.low %v829_v63, %v831_v0 }
 0x38b   : > { %v842_v3 = vrot.slane %v835_v2, %v841_v1 }
 0x38d   : > { %v849_v4 = vrot.slane %v842_v3, %v841_v1 }
 0x38f   : > { %855 = vst.msk [vmem:[%s270_s10] sm:$0x3] %vm853_vm1, %v849_v4 }
 0x390   : > { %1112 = shalt.err (!%p1109_p3)
}
 0x391   : > { %s1113_s22 = scalar_lea.hbm %s869_s17, 32  ;;  %s1117_s25 = scalar_lea.hbm %s1458_s7, 96 }
 0x392   : > { %p1114_p4 = scmp.ne.s32.totalorder %s869_s17, %s1113_s22  ;;  %p1118_p9 = scmp.lt.s32.totalorder %s869_s17, %s1458_s7 }
 0x393   : > { %p1119_p10 = scmp.lt.s32.totalorder %s1117_s25, %s1113_s22 }
 0x394   : > { %p1115_p7 = pnand %p1114_p4, %p1246_p5 }
 0x395   : > { %p1120_p11 = por %p1119_p10, %p1118_p9 }
 0x396   : > { %p1116_p8 = pneg %p1115_p7 }
 0x398   : > { %p1121_p12 = pnand %p1120_p11, %p1116_p8 }
 0x39a   : > { %1124 = shalt.err (!%p1121_p12)
}
 0x39b   : > { %959 = dma.vmem_to_hbm [thread:$0]  (%p1246_p5), %s872_s14, 32, %s869_s17, %s857_s18  }
 0x39c PF: > { %p965_p13 = scmp.ge.s32.totalorder %s1159_s29, 2  ;;  %s883_s10 = sand.u32 1, %s1147_s26  }
 0x39d   : > { %s884_s15 = scalar_lea.sflag [#allocation4], %s883_s10 }
 0x39e   : > { %p962_p0 = pnand %p965_p13, %p1250_p6 }
 0x3a0   : > { %p963_p1 = pneg %p962_p0 }
 0x3a2   : > { %1142 = dma.done.wait (%p963_p1), %s884_s15, 32  }
 0x3a3   : > { %1144 = vsyncadd (%p963_p1), %s884_s15, 4294967264  ;;  %p18_p2 = scmp.ge.s32.totalorder %s1233_s8, 5   ;;  %s1461_s26 = smov %s1151_s27 }
 0x3a4   : > { %s1462_s27 = smov %s1155_s28  ;;  %s1463_s28 = smov %s1244_s11 }
 0x3a5   : > { %s1464_s29 = smov %s1233_s8  ;;  %20 = sbr.rel (!%p18_p2) target bundleno = 5 (0x5), region = 85 }
 0x3aa   :  { %889 = vsyncpa [#allocation4], 1 }
 0x3ab   :  { %891 = vsyncpa [#allocation4 + $0x1], 1 }

</bundles_post_ra>
